<compile_context>
chip_gen: v7x
topology: tpu7x:2x2x1
jax: 0.10.0
libtpu: 0.0.40
codegen_flags: <defaults>
</compile_context>

<pallas_src>
import functools
import math

import jax
import jax.numpy as jnp
from jax import lax
from jax.experimental import pallas as pl
from jax.experimental.pallas import tpu as pltpu


_MASK_VALUE = -1e30
_VMEM_LIMIT = 64 * 1024 * 1024


def _round_up(x, m):
    return (x + m - 1) // m * m


def _layernorm(z, g, b, eps):
    mean = jnp.mean(z, axis=-1, keepdims=True)
    zc = z - mean
    var = jnp.mean(zc * zc, axis=-1, keepdims=True)
    return zc * lax.rsqrt(var + eps) * g + b


# ---------------------------------------------------------------------------
# Attention block kernel.  grid = (B, H); head axis is a reduction axis.
# acc (VMEM f32 scratch) holds  x + bo + sum_h head_h @ wo_h ; LayerNorm at h==H-1.
# ---------------------------------------------------------------------------
def _attn_head_kernel(*refs, self_attn, dh, causal, eps):
    if self_attn:
        (xq_ref, wqkv_ref, bqkv_ref, wo_ref, bo_ref, g_ref, b_ref,
         o_ref, acc_ref) = refs
    else:
        (xq_ref, xkv_ref, wq_ref, bq_ref, wkv_ref, bkv_ref, wo_ref, bo_ref,
         g_ref, b_ref, o_ref, acc_ref) = refs

    h = pl.program_id(1)
    cdt = wo_ref.dtype                       # matmul operand dtype (f32 / bf16)
    xq = xq_ref[...]                         # (L, D) f32 residual / query source

    @pl.when(h == 0)
    def _init():
        acc_ref[...] = xq + bo_ref[...]      # residual + out-proj bias (added once)

    if self_attn:
        # fused per-head (Q|K|V) projection: one (L, D) @ (D, 3*dh) MXU pass
        qkv = jnp.dot(xq.astype(cdt), wqkv_ref[...],
                      preferred_element_type=jnp.float32) + bqkv_ref[...]
        q = qkv[:, :dh]
        k = qkv[:, dh:2 * dh]
        v = qkv[:, 2 * dh:]
    else:
        src = xkv_ref[...]                   # (S, D)
        q = jnp.dot(xq.astype(cdt), wq_ref[...],
                    preferred_element_type=jnp.float32) + bq_ref[...]
        kv = jnp.dot(src.astype(cdt), wkv_ref[...],
                     preferred_element_type=jnp.float32) + bkv_ref[...]
        k = kv[:, :dh]
        v = kv[:, dh:]

    # scores: q @ k^T via dot_general (native trans_b).  1/sqrt(dh) is folded
    # into wq/bq at pack time, so no extra scaling here.
    s = lax.dot_general(q.astype(cdt), k.astype(cdt),
                        (((1,), (1,)), ((), ())),
                        preferred_element_type=jnp.float32)          # (L, S)
    if causal:
        L, S = s.shape
        qi = lax.broadcasted_iota(jnp.int32, (L, S), 0)
        ki = lax.broadcasted_iota(jnp.int32, (L, S), 1)
        s = jnp.where(ki <= qi, s, _MASK_VALUE)

    m = jnp.max(s, axis=-1, keepdims=True)
    p = jnp.exp(s - m)
    p = p * pl.reciprocal(jnp.sum(p, axis=-1, keepdims=True), approx=True)

    head = jnp.dot(p.astype(cdt), v.astype(cdt),
                   preferred_element_type=jnp.float32)               # (L, dh)
    acc_ref[...] += jnp.dot(head.astype(cdt), wo_ref[...],
                            preferred_element_type=jnp.float32)      # (L, D)

    @pl.when(h == pl.num_programs(1) - 1)
    def _finalize():
        o_ref[...] = _layernorm(acc_ref[...], g_ref[...], b_ref[...],
                                eps).astype(o_ref.dtype)


def _attn_compiler_params():
    return pltpu.CompilerParams(
        dimension_semantics=("parallel", "arbitrary"),
        vmem_limit_bytes=_VMEM_LIMIT)


def self_attention_block(x, wqkv, bqkv, wo, bo, gamma, beta, *, eps=1e-5):
    B, L, D = x.shape
    H = wqkv.shape[0]
    dh = wqkv.shape[2] // 3
    kern = functools.partial(_attn_head_kernel, self_attn=True, dh=dh,
                             causal=True, eps=eps)
    flops = int(2 * B * L * D * 3 * D + 4 * B * L * L * D + 2 * B * L * D * D)
    cost = pl.CostEstimate(flops=flops,
                           transcendentals=int(B * H * L * L),
                           bytes_accessed=int(4 * (2 * B * L * D + 4 * D * D)))
    return pl.pallas_call(
        kern,
        out_shape=jax.ShapeDtypeStruct((B, L, D), x.dtype),
        grid=(B, H),
        in_specs=[
            pl.BlockSpec((None, L, D), lambda b, h: (b, 0, 0)),        # x
            pl.BlockSpec((None, D, 3 * dh), lambda b, h: (h, 0, 0)),   # wqkv[h]
            pl.BlockSpec((None, 1, 3 * dh), lambda b, h: (h, 0, 0)),   # bqkv[h]
            pl.BlockSpec((None, dh, D), lambda b, h: (h, 0, 0)),       # wo[h]
            pl.BlockSpec((1, D), lambda b, h: (0, 0)),                 # bo
            pl.BlockSpec((1, D), lambda b, h: (0, 0)),                 # gamma
            pl.BlockSpec((1, D), lambda b, h: (0, 0)),                 # beta
        ],
        out_specs=pl.BlockSpec((None, L, D), lambda b, h: (b, 0, 0)),
        scratch_shapes=[pltpu.VMEM((L, D), jnp.float32)],
        compiler_params=_attn_compiler_params(),
        cost_estimate=cost,
    )(x, wqkv, bqkv, wo, bo, gamma, beta)


def cross_attention_block(xq, xkv, wq, bq, wkv, bkv, wo, bo, gamma, beta,
                          *, eps=1e-5):
    B, L, D = xq.shape
    S = xkv.shape[1]
    H, _, dh = wq.shape
    kern = functools.partial(_attn_head_kernel, self_attn=False, dh=dh,
                             causal=False, eps=eps)
    flops = int(2 * B * L * D * D + 2 * B * S * D * 2 * D
                + 4 * B * L * S * D + 2 * B * L * D * D)
    cost = pl.CostEstimate(flops=flops,
                           transcendentals=int(B * H * L * S),
                           bytes_accessed=int(4 * (B * (2 * L + S) * D + 4 * D * D)))
    return pl.pallas_call(
        kern,
        out_shape=jax.ShapeDtypeStruct((B, L, D), xq.dtype),
        grid=(B, H),
        in_specs=[
            pl.BlockSpec((None, L, D), lambda b, h: (b, 0, 0)),        # xq (residual)
            pl.BlockSpec((None, S, D), lambda b, h: (b, 0, 0)),        # cross (K/V src)
            pl.BlockSpec((None, D, dh), lambda b, h: (h, 0, 0)),       # wq[h]
            pl.BlockSpec((None, 1, dh), lambda b, h: (h, 0, 0)),       # bq[h]
            pl.BlockSpec((None, D, 2 * dh), lambda b, h: (h, 0, 0)),   # wkv[h]
            pl.BlockSpec((None, 1, 2 * dh), lambda b, h: (h, 0, 0)),   # bkv[h]
            pl.BlockSpec((None, dh, D), lambda b, h: (h, 0, 0)),       # wo[h]
            pl.BlockSpec((1, D), lambda b, h: (0, 0)),                 # bo
            pl.BlockSpec((1, D), lambda b, h: (0, 0)),                 # gamma
            pl.BlockSpec((1, D), lambda b, h: (0, 0)),                 # beta
        ],
        out_specs=pl.BlockSpec((None, L, D), lambda b, h: (b, 0, 0)),
        scratch_shapes=[pltpu.VMEM((L, D), jnp.float32)],
        compiler_params=_attn_compiler_params(),
        cost_estimate=cost,
    )(xq, xkv, wq, bq, wkv, bkv, wo, bo, gamma, beta)


# ---------------------------------------------------------------------------
# FFN block kernel: LayerNorm( x + conv2(ReLU(conv1(x))) ), F tiled as reduction.
# ---------------------------------------------------------------------------
def _ffn_kernel(x_ref, w1_ref, b1_ref, w2_ref, b2_ref, g_ref, b_ref, o_ref,
                acc_ref, *, eps):
    f = pl.program_id(1)
    cdt = w1_ref.dtype
    x = x_ref[...]                                  # (tm, D) f32

    @pl.when(f == 0)
    def _init():
        acc_ref[...] = x + b2_ref[...]              # residual + conv2 bias

    hdn = jnp.dot(x.astype(cdt), w1_ref[...],
                  preferred_element_type=jnp.float32) + b1_ref[...]   # (tm, tf)
    hdn = jnp.maximum(hdn, 0.0)                     # ReLU in f32
    acc_ref[...] += jnp.dot(hdn.astype(cdt), w2_ref[...],
                            preferred_element_type=jnp.float32)       # (tm, D)

    @pl.when(f == pl.num_programs(1) - 1)
    def _finalize():
        o_ref[...] = _layernorm(acc_ref[...], g_ref[...], b_ref[...],
                                eps).astype(o_ref.dtype)


def _pick_ff_tile(F):
    for t in (1024, 512, 256, 128):
        if t < F and F % t == 0:
            return t
    return F


def ffn_block(x2d, w1, b1, w2, b2, gamma, beta, *, eps=1e-5):
    M, D = x2d.shape
    F = w1.shape[1]
    tm = min(256, _round_up(M, 8))
    Mp = _round_up(M, tm)
    xp = x2d if Mp == M else jnp.pad(x2d, ((0, Mp - M), (0, 0)))
    tf = _pick_ff_tile(F)

    kern = functools.partial(_ffn_kernel, eps=eps)
    cost = pl.CostEstimate(flops=int(4 * Mp * D * F),
                           transcendentals=0,
                           bytes_accessed=int(4 * (2 * Mp * D + 2 * D * F)))
    out = pl.pallas_call(
        kern,
        out_shape=jax.ShapeDtypeStruct((Mp, D), x2d.dtype),
        grid=(Mp // tm, F // tf),
        in_specs=[
            pl.BlockSpec((tm, D), lambda i, f: (i, 0)),   # x rows
            pl.BlockSpec((D, tf), lambda i, f: (0, f)),   # w1 F-slice
            pl.BlockSpec((1, tf), lambda i, f: (0, f)),   # b1 F-slice
            pl.BlockSpec((tf, D), lambda i, f: (f, 0)),   # w2 F-slice
            pl.BlockSpec((1, D), lambda i, f: (0, 0)),    # b2
            pl.BlockSpec((1, D), lambda i, f: (0, 0)),    # gamma
            pl.BlockSpec((1, D), lambda i, f: (0, 0)),    # beta
        ],
        out_specs=pl.BlockSpec((tm, D), lambda i, f: (i, 0)),
        scratch_shapes=[pltpu.VMEM((tm, D), jnp.float32)],
        compiler_params=pltpu.CompilerParams(
            dimension_semantics=("parallel", "arbitrary"),
            vmem_limit_bytes=_VMEM_LIMIT),
        cost_estimate=cost,
    )(xp, w1, b1, w2, b2, gamma, beta)
    return out[:M] if Mp != M else out


# ---------------------------------------------------------------------------
# Parameter packing: per-head weight slabs, fused QKV (self) / KV (cross),
# 1/sqrt(dh) folded into wq/bq, weights cast to the matmul compute dtype.
# Biases / LayerNorm params stay f32 (all elementwise math stays f32).
# ---------------------------------------------------------------------------
def pack_params(p, compute_dtype=jnp.float32):
    H = p["n_heads"]
    cd = compute_dtype
    D = p["sa_wq"].shape[0]
    dh = D // H
    scale = 1.0 / math.sqrt(dh)

    def heads_in(w):    # (D, D): output cols grouped by head -> (H, D, dh)
        return jnp.transpose(w.reshape(D, H, dh), (1, 0, 2))

    def heads_bias(b):  # (D,) -> (H, 1, dh)
        return b.reshape(H, 1, dh)

    def heads_out(w):   # (D, D): input rows grouped by head -> (H, dh, D)
        return w.reshape(H, dh, D)

    out = {"n_heads": H}

    # self attention: fused per-head (Q|K|V)
    wq = heads_in(p["sa_wq"]) * scale
    bq = heads_bias(p["sa_bq"]) * scale
    out["sa_wqkv"] = jnp.concatenate(
        [wq, heads_in(p["sa_wk"]), heads_in(p["sa_wv"])], axis=2).astype(cd)
    out["sa_bqkv"] = jnp.concatenate(
        [bq, heads_bias(p["sa_bk"]), heads_bias(p["sa_bv"])], axis=2)
    out["sa_wo"] = heads_out(p["sa_wo"]).astype(cd)
    out["sa_bo"] = p["sa_bo"].reshape(1, D)

    # cross attention: Q separate (projects from x), K|V fused (from cross)
    out["ca_wq"] = (heads_in(p["ca_wq"]) * scale).astype(cd)
    out["ca_bq"] = heads_bias(p["ca_bq"]) * scale
    out["ca_wkv"] = jnp.concatenate(
        [heads_in(p["ca_wk"]), heads_in(p["ca_wv"])], axis=2).astype(cd)
    out["ca_bkv"] = jnp.concatenate(
        [heads_bias(p["ca_bk"]), heads_bias(p["ca_bv"])], axis=2)
    out["ca_wo"] = heads_out(p["ca_wo"]).astype(cd)
    out["ca_bo"] = p["ca_bo"].reshape(1, D)

    # FFN (1x1 convs == pointwise matmuls)
    F = p["w1"].shape[1]
    out["w1"] = p["w1"].astype(cd)
    out["b1"] = p["b1"].reshape(1, F)
    out["w2"] = p["w2"].astype(cd)
    out["b2"] = p["b2"].reshape(1, D)
    for i in (1, 2, 3):
        out[f"ln{i}_g"] = p[f"ln{i}_g"].reshape(1, D)
        out[f"ln{i}_b"] = p[f"ln{i}_b"].reshape(1, D)
    return out


# ---------------------------------------------------------------------------
# DecoderLayer forward: 3 fused pallas_calls total.
# ---------------------------------------------------------------------------
def decoder_layer_forward(pp, x, cross, *, eps=1e-5):
    # dropout is identity (eval mode)
    B, L, D = x.shape

    # x = norm1(x + self_attention(x, x, x))            [causal]
    x1 = self_attention_block(x, pp["sa_wqkv"], pp["sa_bqkv"], pp["sa_wo"],
                              pp["sa_bo"], pp["ln1_g"], pp["ln1_b"], eps=eps)

    # x = norm2(x + cross_attention(x, cross, cross))   [unmasked]
    x2 = cross_attention_block(x1, cross, pp["ca_wq"], pp["ca_bq"],
                               pp["ca_wkv"], pp["ca_bkv"], pp["ca_wo"],
                               pp["ca_bo"], pp["ln2_g"], pp["ln2_b"], eps=eps)

    # out = norm3(x + conv2(relu(conv1(x))))
    y = ffn_block(x2.reshape(B * L, D), pp["w1"], pp["b1"], pp["w2"],
                  pp["b2"], pp["ln3_g"], pp["ln3_b"], eps=eps)
    return y.reshape(B, L, D)


# ---------------------------------------------------------------------------
# Pure-JAX reference (for correctness check)
# ---------------------------------------------------------------------------
def _ref_forward(p, x, cross):
    H = p["n_heads"]
    eps = 1e-5

    def ln(z, g, b):
        m = z.mean(-1, keepdims=True)
        v = ((z - m) ** 2).mean(-1, keepdims=True)
        return (z - m) / jnp.sqrt(v + eps) * g + b

    def mha(xq, xkv, pre, causal):
        B, L, D = xq.shape
        S = xkv.shape[1]
        dh = D // H
        q = (xq @ p[pre + "_wq"] + p[pre + "_bq"]).reshape(B, L, H, dh)
        k = (xkv @ p[pre + "_wk"] + p[pre + "_bk"]).reshape(B, S, H, dh)
        v = (xkv @ p[pre + "_wv"] + p[pre + "_bv"]).reshape(B, S, H, dh)
        s = jnp.einsum("blhe,bshe->bhls", q, k) / math.sqrt(dh)
        if causal:
            mask = jnp.tril(jnp.ones((L, S), bool))
            s = jnp.where(mask, s, -jnp.inf)
        a = jax.nn.softmax(s, axis=-1)
        o = jnp.einsum("bhls,bshd->blhd", a, v).reshape(B, L, D)
        return o @ p[pre + "_wo"] + p[pre + "_bo"]

    x1 = ln(x + mha(x, x, "sa", True), p["ln1_g"], p["ln1_b"])
    x2 = ln(x1 + mha(x1, cross, "ca", False), p["ln2_g"], p["ln2_b"])
    y = jax.nn.relu(x2 @ p["w1"] + p["b1"]) @ p["w2"] + p["b2"]
    return ln(x2 + y, p["ln3_g"], p["ln3_b"])


# ---------------------------------------------------------------------------
# Deterministic parameter init + driver
# ---------------------------------------------------------------------------
def init_params(key, d_model, d_ff, n_heads):
    keys = jax.random.split(key, 16)
    it = iter(keys)

    def w(shape):
        return (0.02 * jax.random.normal(next(it), shape)).astype(jnp.float32)

    p = {"n_heads": n_heads}
    for pre in ("sa", "ca"):
        p[pre + "_wq"] = w((d_model, d_model)); p[pre + "_bq"] = jnp.zeros((d_model,), jnp.float32)
        p[pre + "_wk"] = w((d_model, d_model)); p[pre + "_bk"] = jnp.zeros((d_model,), jnp.float32)
        p[pre + "_wv"] = w((d_model, d_model)); p[pre + "_bv"] = jnp.zeros((d_model,), jnp.float32)
        p[pre + "_wo"] = w((d_model, d_model)); p[pre + "_bo"] = jnp.zeros((d_model,), jnp.float32)
    p["w1"] = w((d_model, d_ff)); p["b1"] = jnp.zeros((d_ff,), jnp.float32)
    p["w2"] = w((d_ff, d_model)); p["b2"] = jnp.zeros((d_model,), jnp.float32)
    for i in (1, 2, 3):
        p[f"ln{i}_g"] = jnp.ones((d_model,), jnp.float32)
        p[f"ln{i}_b"] = jnp.zeros((d_model,), jnp.float32)
    return p


if __name__ == "__main__":
    B, L, S = 2, 16, 24          # batch, target seq len, cross (memory) seq len
    d_model, n_heads = 128, 4    # D = 128 keeps every output lane-dense
    d_ff = 4 * d_model

    root = jax.random.PRNGKey(0)
    kx, kc, kp = jax.random.split(root, 3)
    x = jax.random.normal(kx, (B, L, d_model), dtype=jnp.float32)
    cross = jax.random.normal(kc, (B, S, d_model), dtype=jnp.float32)
    params = init_params(kp, d_model, d_ff, n_heads)
    ref = _ref_forward(params, x, cross)

    # f32 matmul operands: tight check against the pure-JAX reference.
    out_f32 = jax.block_until_ready(
        decoder_layer_forward(pack_params(params, jnp.float32), x, cross))
    assert out_f32.shape == (B, L, d_model)
    assert jnp.allclose(out_f32, ref, atol=2e-3, rtol=2e-3), "f32 mismatch vs reference"

    # bf16 matmul operands everywhere (incl. QK^T), f32 MXU accumulation.
    out_bf16 = jax.block_until_ready(
        decoder_layer_forward(pack_params(params, jnp.bfloat16), x, cross))
    assert out_bf16.shape == (B, L, d_model)
    assert jnp.allclose(out_bf16, ref, atol=8e-2, rtol=8e-2), "bf16 mismatch vs reference"

    print("KERNEL_OK")
</pallas_src>

<mosaic_0001>
module attributes {stable_mosaic.version = 11 : i64} {
  func.func @_attn_head_kernel(%arg0: i32, %arg1: i32, %arg2: memref<1x16x128xf32, #tpu.memory_space<vmem>>, %arg3: memref<1x128x96xf32, #tpu.memory_space<vmem>>, %arg4: memref<1x1x96xf32, #tpu.memory_space<vmem>>, %arg5: memref<1x32x128xf32, #tpu.memory_space<vmem>>, %arg6: memref<1x128xf32, #tpu.memory_space<vmem>>, %arg7: memref<1x128xf32, #tpu.memory_space<vmem>>, %arg8: memref<1x128xf32, #tpu.memory_space<vmem>>, %arg9: memref<1x16x128xf32, #tpu.memory_space<vmem>>, %arg10: memref<16x128xf32, #tpu.memory_space<vmem>>) attributes {dimension_semantics = [#tpu.dimension_semantics<parallel>, #tpu.dimension_semantics<arbitrary>], iteration_bounds = array<i64: 2, 4>, scalar_prefetch = 0 : i64, scratch_operands = 1 : i64, tpu.core_type = #tpu.core_type<tc>, window_params = [{transform_indices = @transform_0, window_bounds = array<i64: 1, 16, 128>}, {transform_indices = @transform_1, window_bounds = array<i64: 1, 128, 96>}, {transform_indices = @transform_2, window_bounds = array<i64: 1, 1, 96>}, {transform_indices = @transform_3, window_bounds = array<i64: 1, 32, 128>}, {pipeline_mode = #tpu.pipeline_mode<synchronous>, transform_indices = @transform_4, window_bounds = array<i64: 1, 128>}, {pipeline_mode = #tpu.pipeline_mode<synchronous>, transform_indices = @transform_5, window_bounds = array<i64: 1, 128>}, {pipeline_mode = #tpu.pipeline_mode<synchronous>, transform_indices = @transform_6, window_bounds = array<i64: 1, 128>}, {transform_indices = @transform_7, window_bounds = array<i64: 1, 16, 128>}]} {
    %c0 = arith.constant 0 : index
    %c0_0 = arith.constant 0 : index
    %c0_1 = arith.constant 0 : index
    %0 = vector.load %arg2[%c0, %c0_0, %c0_1] : memref<1x16x128xf32, #tpu.memory_space<vmem>>, vector<1x16x128xf32>
    %1 = vector.shape_cast %0 : vector<1x16x128xf32> to vector<16x128xf32>
    %c0_i32 = arith.constant 0 : i32
    %2 = arith.cmpi eq, %arg1, %c0_i32 : i32
    %3 = arith.extui %2 : i1 to i32
    %c0_i32_2 = arith.constant 0 : i32
    %4 = arith.cmpi ne, %3, %c0_i32_2 : i32
    scf.if %4 {
      %c0_23 = arith.constant 0 : index
      %c0_24 = arith.constant 0 : index
      %41 = vector.load %arg6[%c0_23, %c0_24] : memref<1x128xf32, #tpu.memory_space<vmem>>, vector<1x128xf32>
      %42 = vector.broadcast %41 : vector<1x128xf32> to vector<16x128xf32>
      %43 = arith.addf %1, %42 : vector<16x128xf32>
      %c0_25 = arith.constant 0 : index
      %c0_26 = arith.constant 0 : index
      %44 = vector.load %arg10[%c0_25, %c0_26] : memref<16x128xf32, #tpu.memory_space<vmem>>, vector<16x128xf32>
      tpu.vector_store %arg10[%c0_25, %c0_26], %43 {strides = array<i32>} : memref<16x128xf32, #tpu.memory_space<vmem>>, vector<16x128xf32>,
    } else {
    }
    %c0_3 = arith.constant 0 : index
    %c0_4 = arith.constant 0 : index
    %c0_5 = arith.constant 0 : index
    %5 = vector.load %arg3[%c0_3, %c0_4, %c0_5] : memref<1x128x96xf32, #tpu.memory_space<vmem>>, vector<1x128x96xf32>
    %6 = vector.shape_cast %5 : vector<1x128x96xf32> to vector<128x96xf32>
    %cst = arith.constant dense<0.000000e+00> : vector<16x96xf32>
    %7 = tpu.matmul %1, %6, %cst {dimension_numbers = #tpu.dot_dimension_numbers<[1], [0], [0], [1], [0, 0, 1, 1], [], []>} : vector<16x128xf32>, vector<128x96xf32>, vector<16x96xf32> -> vector<16x96xf32>
    %c0_6 = arith.constant 0 : index
    %c0_7 = arith.constant 0 : index
    %c0_8 = arith.constant 0 : index
    %8 = vector.load %arg4[%c0_6, %c0_7, %c0_8] : memref<1x1x96xf32, #tpu.memory_space<vmem>>, vector<1x1x96xf32>
    %9 = vector.shape_cast %8 : vector<1x1x96xf32> to vector<1x96xf32>
    %10 = vector.broadcast %9 : vector<1x96xf32> to vector<16x96xf32>
    %11 = arith.addf %7, %10 : vector<16x96xf32>
    %12 = vector.extract_strided_slice %11 {offsets = [0, 0], sizes = [16, 32], strides = [1, 1]} : vector<16x96xf32> to vector<16x32xf32>
    %13 = vector.extract_strided_slice %11 {offsets = [0, 32], sizes = [16, 32], strides = [1, 1]} : vector<16x96xf32> to vector<16x32xf32>
    %14 = vector.extract_strided_slice %11 {offsets = [0, 64], sizes = [16, 32], strides = [1, 1]} : vector<16x96xf32> to vector<16x32xf32>
    %cst_9 = arith.constant dense<0.000000e+00> : vector<16x16xf32>
    %15 = tpu.matmul %12, %13, %cst_9 {dimension_numbers = #tpu.dot_dimension_numbers<[1], [1], [0], [0], [0, 0, 1, 0], [], []>} : vector<16x32xf32>, vector<16x32xf32>, vector<16x16xf32> -> vector<16x16xf32>
    %16 = tpu.iota {dimensions = array<i32: 0>} : vector<16x16xi32>
    %17 = tpu.iota {dimensions = array<i32: 1>} : vector<16x16xi32>
    %18 = arith.cmpi sle, %17, %16 : vector<16x16xi32>
    %cst_10 = arith.constant -1.000000e+30 : f32
    %19 = vector.broadcast %cst_10 : f32 to vector<16x16xf32>
    %20 = arith.select %18, %15, %19 : vector<16x16xi1>, vector<16x16xf32>
    %cst_11 = arith.constant dense<0xFF800000> : vector<16xf32>
    %21 = vector.multi_reduction <maximumf>, %20, %cst_11 [1] : vector<16x16xf32> to vector<16xf32>
    %22 = vector.shape_cast %21 : vector<16xf32> to vector<16x1xf32>
    %23 = vector.broadcast %22 : vector<16x1xf32> to vector<16x16xf32>
    %24 = arith.subf %20, %23 : vector<16x16xf32>
    %25 = math.exp %24 : vector<16x16xf32>
    %cst_12 = arith.constant dense<0.000000e+00> : vector<16xf32>
    %26 = vector.multi_reduction <add>, %25, %cst_12 [1] : vector<16x16xf32> to vector<16xf32>
    %27 = vector.shape_cast %26 : vector<16xf32> to vector<16x1xf32>
    %28 = tpu.reciprocal %27 {approx = true} : vector<16x1xf32> -> vector<16x1xf32>
    %29 = vector.broadcast %28 : vector<16x1xf32> to vector<16x16xf32>
    %30 = arith.mulf %25, %29 : vector<16x16xf32>
    %cst_13 = arith.constant dense<0.000000e+00> : vector<16x32xf32>
    %31 = tpu.matmul %30, %14, %cst_13 {dimension_numbers = #tpu.dot_dimension_numbers<[1], [0], [0], [1], [0, 0, 1, 1], [], []>} : vector<16x16xf32>, vector<16x32xf32>, vector<16x32xf32> -> vector<16x32xf32>
    %c0_14 = arith.constant 0 : index
    %c0_15 = arith.constant 0 : index
    %32 = vector.load %arg10[%c0_14, %c0_15] : memref<16x128xf32, #tpu.memory_space<vmem>>, vector<16x128xf32>
    %c0_16 = arith.constant 0 : index
    %c0_17 = arith.constant 0 : index
    %c0_18 = arith.constant 0 : index
    %33 = vector.load %arg5[%c0_16, %c0_17, %c0_18] : memref<1x32x128xf32, #tpu.memory_space<vmem>>, vector<1x32x128xf32>
    %34 = vector.shape_cast %33 : vector<1x32x128xf32> to vector<32x128xf32>
    %cst_19 = arith.constant dense<0.000000e+00> : vector<16x128xf32>
    %35 = tpu.matmul %31, %34, %cst_19 {dimension_numbers = #tpu.dot_dimension_numbers<[1], [0], [0], [1], [0, 0, 1, 1], [], []>} : vector<16x32xf32>, vector<32x128xf32>, vector<16x128xf32> -> vector<16x128xf32>
    %36 = arith.addf %32, %35 : vector<16x128xf32>
    %c0_20 = arith.constant 0 : index
    %c0_21 = arith.constant 0 : index
    %37 = vector.load %arg10[%c0_20, %c0_21] : memref<16x128xf32, #tpu.memory_space<vmem>>, vector<16x128xf32>
    tpu.vector_store %arg10[%c0_20, %c0_21], %36 {strides = array<i32>} : memref<16x128xf32, #tpu.memory_space<vmem>>, vector<16x128xf32>,
    %c3_i32 = arith.constant 3 : i32
    %38 = arith.cmpi eq, %arg1, %c3_i32 : i32
    %39 = arith.extui %38 : i1 to i32
    %c0_i32_22 = arith.constant 0 : i32
    %40 = arith.cmpi ne, %39, %c0_i32_22 : i32
    scf.if %40 {
      %c0_23 = arith.constant 0 : index
      %c0_24 = arith.constant 0 : index
      %41 = vector.load %arg10[%c0_23, %c0_24] : memref<16x128xf32, #tpu.memory_space<vmem>>, vector<16x128xf32>
      %c0_25 = arith.constant 0 : index
      %c0_26 = arith.constant 0 : index
      %42 = vector.load %arg7[%c0_25, %c0_26] : memref<1x128xf32, #tpu.memory_space<vmem>>, vector<1x128xf32>
      %c0_27 = arith.constant 0 : index
      %c0_28 = arith.constant 0 : index
      %43 = vector.load %arg8[%c0_27, %c0_28] : memref<1x128xf32, #tpu.memory_space<vmem>>, vector<1x128xf32>
      %cst_29 = arith.constant dense<0.000000e+00> : vector<16xf32>
      %44 = vector.multi_reduction <add>, %41, %cst_29 [1] : vector<16x128xf32> to vector<16xf32>
      %45 = vector.shape_cast %44 : vector<16xf32> to vector<16x1xf32>
      %cst_30 = arith.constant 1.280000e+02 : f32
      %46 = vector.broadcast %cst_30 : f32 to vector<16x1xf32>
      %47 = arith.divf %45, %46 : vector<16x1xf32>
      %48 = vector.broadcast %47 : vector<16x1xf32> to vector<16x128xf32>
      %49 = arith.subf %41, %48 : vector<16x128xf32>
      %50 = arith.mulf %49, %49 : vector<16x128xf32>
      %cst_31 = arith.constant dense<0.000000e+00> : vector<16xf32>
      %51 = vector.multi_reduction <add>, %50, %cst_31 [1] : vector<16x128xf32> to vector<16xf32>
      %52 = vector.shape_cast %51 : vector<16xf32> to vector<16x1xf32>
      %cst_32 = arith.constant 1.280000e+02 : f32
      %53 = vector.broadcast %cst_32 : f32 to vector<16x1xf32>
      %54 = arith.divf %52, %53 : vector<16x1xf32>
      %cst_33 = arith.constant 9.99999974E-6 : f32
      %55 = vector.broadcast %cst_33 : f32 to vector<16x1xf32>
      %56 = arith.addf %54, %55 : vector<16x1xf32>
      %57 = math.rsqrt %56 : vector<16x1xf32>
      %58 = vector.broadcast %57 : vector<16x1xf32> to vector<16x128xf32>
      %59 = arith.mulf %49, %58 : vector<16x128xf32>
      %60 = vector.broadcast %42 : vector<1x128xf32> to vector<16x128xf32>
      %61 = arith.mulf %59, %60 : vector<16x128xf32>
      %62 = vector.broadcast %43 : vector<1x128xf32> to vector<16x128xf32>
      %63 = arith.addf %61, %62 : vector<16x128xf32>
      %c0_34 = arith.constant 0 : index
      %c0_35 = arith.constant 0 : index
      %c0_36 = arith.constant 0 : index
      %64 = vector.load %arg9[%c0_34, %c0_35, %c0_36] : memref<1x16x128xf32, #tpu.memory_space<vmem>>, vector<1x16x128xf32>
      %65 = vector.shape_cast %64 : vector<1x16x128xf32> to vector<16x128xf32>
      %66 = vector.shape_cast %63 : vector<16x128xf32> to vector<1x16x128xf32>
      tpu.vector_store %arg9[%c0_34, %c0_35, %c0_36], %66 {strides = array<i32>} : memref<1x16x128xf32, #tpu.memory_space<vmem>>, vector<1x16x128xf32>,
    } else {
    }
    return
  }
  func.func @transform_0(%arg0: i32, %arg1: i32) -> (i32, i32, i32) {
    %c0_i32 = arith.constant 0 : i32
    %c0_i32_0 = arith.constant 0 : i32
    %c0_i32_1 = arith.constant 0 : i32
    return %arg0, %c0_i32, %c0_i32_0 : i32, i32, i32
  }
  func.func @transform_1(%arg0: i32, %arg1: i32) -> (i32, i32, i32) {
    %c0_i32 = arith.constant 0 : i32
    %c0_i32_0 = arith.constant 0 : i32
    %c0_i32_1 = arith.constant 0 : i32
    return %arg1, %c0_i32, %c0_i32_0 : i32, i32, i32
  }
  func.func @transform_2(%arg0: i32, %arg1: i32) -> (i32, i32, i32) {
    %c0_i32 = arith.constant 0 : i32
    %c0_i32_0 = arith.constant 0 : i32
    %c0_i32_1 = arith.constant 0 : i32
    return %arg1, %c0_i32, %c0_i32_0 : i32, i32, i32
  }
  func.func @transform_3(%arg0: i32, %arg1: i32) -> (i32, i32, i32) {
    %c0_i32 = arith.constant 0 : i32
    %c0_i32_0 = arith.constant 0 : i32
    %c0_i32_1 = arith.constant 0 : i32
    return %arg1, %c0_i32, %c0_i32_0 : i32, i32, i32
  }
  func.func @transform_4(%arg0: i32, %arg1: i32) -> (i32, i32) {
    %c0_i32 = arith.constant 0 : i32
    %c0_i32_0 = arith.constant 0 : i32
    %c0_i32_1 = arith.constant 0 : i32
    return %c0_i32, %c0_i32_0 : i32, i32
  }
  func.func @transform_5(%arg0: i32, %arg1: i32) -> (i32, i32) {
    %c0_i32 = arith.constant 0 : i32
    %c0_i32_0 = arith.constant 0 : i32
    %c0_i32_1 = arith.constant 0 : i32
    return %c0_i32, %c0_i32_0 : i32, i32
  }
  func.func @transform_6(%arg0: i32, %arg1: i32) -> (i32, i32) {
    %c0_i32 = arith.constant 0 : i32
    %c0_i32_0 = arith.constant 0 : i32
    %c0_i32_1 = arith.constant 0 : i32
    return %c0_i32, %c0_i32_0 : i32, i32
  }
  func.func @transform_7(%arg0: i32, %arg1: i32) -> (i32, i32, i32) {
    %c0_i32 = arith.constant 0 : i32
    %c0_i32_0 = arith.constant 0 : i32
    %c0_i32_1 = arith.constant 0 : i32
    return %arg0, %c0_i32, %c0_i32_0 : i32, i32, i32
  }
}

</mosaic_0001>

<bundles_post_ra>
// kernel: tpu_custom_call.1
= control target key start
LH: loop header
LB: loop body
LE: loop exit
PB: predicated region body
PF: predicated region fallthrough
CT: control target
= control target key end

     0   :  { %s2390_s0 = inlined_call_operand.hbm [shape: f32[2,16,128], index: 0, kind: input, shape index: {}]   ;;  %s2391_s1 = inlined_call_operand.hbm [shape: f32[4,128,96], index: 1, kind: input, shape index: {}]   ;;  %s2392_s2 = inlined_call_operand.hbm [shape: f32[4,1,96], index: 2, kind: input, shape index: {}]   ;;  %s2393_s3 = inlined_call_operand.hbm [shape: f32[4,32,128], index: 3, kind: input, shape index: {}]   ;;  %s2394_s4 = inlined_call_operand.hbm [shape: f32[1,128], index: 4, kind: input, shape index: {}]   ;;  %s2395_s5 = inlined_call_operand.hbm [shape: f32[1,128], index: 5, kind: input, shape index: {}]   ;;  %s2396_s6 = inlined_call_operand.hbm [shape: f32[1,128], index: 6, kind: input, shape index: {}]   ;;  %s2397_s7 = inlined_call_operand.hbm [shape: f32[2,16,128], index: 7, kind: output, shape index: {}]  }
   0x1   :  { %2425 = sst [smem:[#allocation32_spill]] %s2391_s1 }
   0x2   :  { %2426 = sst [smem:[#allocation33_spill]] %s2394_s4 }
   0x3   :  { %2427 = sst [smem:[#allocation34_spill]] %s2395_s5 }
   0x4   :  { %2428 = sst [smem:[#allocation35_spill]] %s2397_s7 }
   0x5   :  { %12 = vsyncpa [#allocation4], 0 }
   0x6   :  { %14 = vsyncpa [#allocation4 + $0x1], 0 }
   0x7   :  { %15 = vsyncpa [#allocation7], 0 }
   0x8   :  { %17 = vsyncpa [#allocation7 + $0x1], 0 }
   0x9   :  { %18 = vsyncpa [#allocation10], 0 }
   0xa   :  { %20 = vsyncpa [#allocation10 + $0x1], 0 }
   0xb   :  { %21 = vsyncpa [#allocation13], 0 }
   0xc   :  { %22 = vsyncpa [#allocation5], 0 }
   0xd   :  { %24 = vsyncpa [#allocation5 + $0x1], 0  ;;  %s1874_s24 = smov 0   ;;  %s1876_s25 = smov 0  }
   0xe   :  { %s1878_s26 = smov 0   ;;  %s1880_s27 = smov 0  }
   0xf   :  { %s1882_s28 = smov 0   ;;  %s1884_s29 = smov 0  }
  0x10   :  { %s1886_s30 = smov 0   ;;  %s1888_s8 = smov 0  }
  0x11   :  { %s1890_s9 = smov 0   ;;  %s1892_s10 = smov 0  }
  0x12   :  { %s1894_s11 = smov 0  }
  0x13 LB: > { %2429 = sst [smem:[#allocation22_spill]] %s1782_s25  ;;  %s1928_s12 = sadd.s32 4294967295, %s1818_s11   ;;  %s1818_s11 = sphi %s1894_s11, %s30_s11   ;;  %s1814_s10 = sphi %s1892_s10, %s2493_s10   ;;  %s1810_s9 = sphi %s1890_s9, %s2492_s9   ;;  %s1806_s8 = sphi %s1888_s8, %s2491_s8   ;;  %s1802_s30 = sphi %s1886_s30, %s2490_s30   ;;  %s1798_s29 = sphi %s1884_s29, %s2489_s29   ;;  %s1794_s28 = sphi %s1882_s28, %s2488_s28   ;;  %s1790_s27 = sphi %s1880_s27, %s2487_s27   ;;  %s1786_s26 = sphi %s1878_s26, %s2483_s26   ;;  %s1782_s25 = sphi %s1876_s25, %s2486_s25   ;;  %s1778_s24 = sphi %s1874_s24, %s2481_s24  }
  0x14   : > { %2430 = sst [smem:[#allocation23_spill]] %s1786_s26  ;;  %s1111_s13 = sadd.s32 4294967294, %s1818_s11  }
  0x15   : > { %2431 = sst [smem:[#allocation24_spill]] %s1790_s27  ;;  %p62_p0 = scmp.ne.s32.totalorder %s1794_s28, %s1790_s27 }
  0x16   : > { %2432 = sst [smem:[#allocation25_spill]] %s1802_s30  ;;  %p2401_p1 = scmp.eq.s32.totalorder %s1928_s12, 0 }
  0x17   : > { %2433 = sst [smem:[#allocation26_spill]] %s1806_s8  ;;  %p88_p2 = scmp.ne.s32.totalorder %s1782_s25, %s1778_s24 }
  0x18   : > { %p1938_p4 = por %p2401_p1, %p62_p0  ;;  %p233_p5 = scmp.eq.s32.totalorder %s1111_s13, 7 }
  0x19   : > { %p1944_p6 = por %p88_p2, %p2401_p1  ;;  %p1112_p7 = scmp.ge.s32.totalorder %s1818_s11, 1 }
  0x1a   : > { %s2434_s14 = scalar_select %p1938_p4, 1, 0 }
  0x1b   : > { %s2436_s15 = scalar_select %p1944_p6, 1, 0 }
  0x1c   : > { %2435 = sst [smem:[#allocation27_spill]] %s2434_s14  ;;  %p1949_p8 = por %p233_p5, %p62_p0 }
  0x1d   : > { %2437 = sst [smem:[#allocation28_spill]] %s2436_s15  ;;  %p240_p9 = scmp.lt.s32.totalorder %s1818_s11, 9 }
  0x1e   : > { %s2438_s16 = scalar_select %p1949_p8, 1, 0 }
  0x1f   : > { %p1954_p10 = pnand %p1112_p7, %p240_p9  ;;  %s1820_s18 = smov [#allocation11]  }
  0x20   : > { %2439 = sst [smem:[#allocation29_spill]] %s2438_s16  ;;  %s253_s19 = sshll.u32 %s1820_s18, 4  ;;  %s254_s19 = int_to_ptr.vmem [resolvable:$true] %s253_s19 }
  0x21   : > { %s2440_s17 = scalar_select %p1954_p10, 1, 0 }
  0x22   : > { %p1322_p11 = pneg %p1954_p10  ;;  %s1821_s20 = smov [#allocation12]  }
  0x23   : > { %s264_s21 = sshll.u32 %s1821_s20, 4  ;;  %s2442_s4 = sld [smem:[#allocation33_spill]]  ;;  %s1966_s21 = int_to_ptr.vmem [resolvable:$true] %s264_s21 }
  0x24   : > { %p1962_p12 = pnand %p1322_p11, %p2401_p1 }
  0x26   : > { %s2441_s22 = scalar_select %p1962_p12, 1, 0 }
  0x27   : > { %p1976_p0 = pneg %p1962_p12 }
  0x29   : > { %s1476_s13 = scalar_lea.hbm %s2442_s4, 16 }
  0x2a   : > { %p1477_p13 = scmp.ne.s32.totalorder %s2442_s4, %s1476_s13  ;;  %p1483_p7 = scmp.lt.u32.totalorder %s1476_s13, %s2442_s4 }
  0x2b   : > { %s2443_s18 = scalar_select %p1976_p0, 1, 0 }
  0x2c   : > { %p1479_p2 = pnand %p1976_p0, %p1477_p13 }
  0x2e   : > { %p1480_p5 = pneg %p1479_p2 }
  0x30   : > { %p1485_p9 = pnand %p1483_p7, %p1480_p5 }
  0x32   : > { %1488 = shalt.err (!%p1485_p9)
}
  0x33   : > { %s1489_s23 = scalar_lea.vmem %s254_s19, 16  ;;  %s1496_s27 = scalar_lea.vmem %s254_s19, 32 }
  0x34   : > { %p1490_p11 = scmp.ne.s32.totalorder %s254_s19, %s1489_s23  ;;  %p1497_p8 = scmp.lt.s32.totalorder %s254_s19, %s254_s19 }
  0x35   : > { %p1498_p6 = scmp.lt.s32.totalorder %s1496_s27, %s1489_s23 }
  0x36   : > { %p1492_p1 = pnand %p1490_p11, %p1976_p0 }
  0x37   : > { %p1499_p4 = por %p1498_p6, %p1497_p8 }
  0x38   : > { %p1493_p3 = pneg %p1492_p1 }
  0x3a   : > { %p1500_p10 = pnand %p1499_p4, %p1493_p3 }
  0x3c   : > { %1503 = shalt.err (!%p1500_p10)
}
  0x3d   : > { %1325 = dma.hbm_to_vmem [thread:$0]  (!%p1962_p12), %s2442_s4, 16, %s254_s19, [#allocation10]  }
  0x3e   : > { %s2444_s5 = sld [smem:[#allocation34_spill]] }
  0x44   : > { %s1504_s20 = scalar_lea.hbm %s2444_s5, 16 }
  0x45   : > { %p1505_p1 = scmp.ne.s32.totalorder %s2444_s5, %s1504_s20  ;;  %p1511_p3 = scmp.lt.u32.totalorder %s1504_s20, %s2444_s5 }
  0x47   : > { %p1507_p13 = pnand %p1505_p1, %p1976_p0 }
  0x49   : > { %p1508_p6 = pneg %p1507_p13 }
  0x4b   : > { %p1513_p4 = pnand %p1511_p3, %p1508_p6 }
  0x4d   : > { %1516 = shalt.err (!%p1513_p4)
}
  0x4e   : > { %s1517_s19 = scalar_lea.vmem %s1966_s21, 16  ;;  %s1524_s30 = scalar_lea.vmem %s1966_s21, 32 }
  0x4f   : > { %p1518_p8 = scmp.ne.s32.totalorder %s1966_s21, %s1517_s19  ;;  %p1525_p5 = scmp.lt.s32.totalorder %s1966_s21, %s1966_s21 }
  0x50   : > { %p1526_p7 = scmp.lt.s32.totalorder %s1524_s30, %s1517_s19 }
  0x51   : > { %p1520_p10 = pnand %p1518_p8, %p1976_p0 }
  0x52   : > { %p1527_p9 = por %p1526_p7, %p1525_p5 }
  0x53   : > { %p1521_p2 = pneg %p1520_p10 }
  0x55   : > { %p1528_p11 = pnand %p1527_p9, %p1521_p2 }
  0x57   : > { %1531 = shalt.err (!%p1528_p11)
}
  0x58   : > { %1328 = dma.hbm_to_vmem [thread:$0]  (!%p1962_p12), %s2444_s5, 16, %s1966_s21, [#allocation13]  }
  0x59   : > { %s39_s24 = sadd.s32 1, %s1810_s9  ;;  %p2408_p1 = scmp.eq.s32.totalorder %s1818_s11, 0 }
  0x5a   : > { %p2018_p13 = scmp.ge.s32.totalorder %s39_s24, 4  ;;  %s75_s13 = sadd.s32 1, %s1786_s26 }
  0x5b   : > { %p82_p6 = scmp.ne.s32.totalorder %s1786_s26, %s1782_s25  ;;  %p2407_p3 = scmp.lt.s32.totalorder %s1818_s11, 8 }
  0x5c   : > { %s2445_s7 = scalar_select %p2018_p13, 1, 0 }
  0x5d   : > { %s2495_s24 = smov (%p2018_p13, %s39_s24), 0  ;;  %p84_p4 = por %p82_p6, %p2408_p1 }
  0x5e   : > { %2446 = sst [smem:[#allocation30_spill]] %s2495_s24  ;;  %s72_s20 = ssub.s32 %s1810_s9, %s2495_s24 }
  0x5f   : > { %p73_p8 = scmp.eq.s32.totalorder %s72_s20, 0  ;;  %s2409_s21 = sand.u32 1, %s1818_s11  }
  0x60   : > { %s2036_s23 = sand.u32 1, %s1786_s26   ;;  %s1155_s30 = sshll.u32 %s1810_s9, 11 }
  0x61   : > { %s2039_s27 = scalar_select %p73_p8, %s1786_s26, %s75_s13  }
  0x62   : > { %s1120_s19 = sshll.u32 %s2036_s23, 7  ;;  %s2448_s1 = sld [smem:[#allocation32_spill]] }
  0x63   : > { %2447 = sst [smem:[#allocation31_spill]] %s2039_s27  ;;  %s311_s5 = scalar_lea.vmem [#allocation6], %s1120_s19 }
  0x64   : > { %s318_s24 = sshll.u32 %s311_s5, 4  ;;  %p2050_p10 = pnand %p2407_p3, %p84_p4  ;;  %s2054_s24 = int_to_ptr.vmem [resolvable:$true] %s318_s24 }
  0x65   : > { %s2058_s13 = scalar_lea.sflag [#allocation7], %s2409_s21 }
  0x66   : > { %s2449_s20 = scalar_select %p2050_p10, 1, 0 }
  0x67   : > { %p2064_p5 = pneg %p2050_p10 }
  0x68   : > { %s2046_s4 = scalar_lea.hbm %s2448_s1, %s1155_s30  ;;  %s1537_s16 = scalar_lea.hbm %s2448_s1, 8192 }
  0x69   : > { %s1532_s8 = scalar_lea.hbm %s2046_s4, 2048  ;;  %p1538_p11 = scmp.lt.u32.totalorder %s2046_s4, %s2448_s1 }
  0x6a   : > { %p1533_p2 = scmp.ne.s32.totalorder %s2046_s4, %s1532_s8  ;;  %p1539_p6 = scmp.lt.u32.totalorder %s1537_s16, %s1532_s8 }
  0x6b   : > { %p1541_p8 = scmp.lt.u32.totalorder %s1532_s8, %s2046_s4 }
  0x6c   : > { %p1535_p7 = pnand %p2064_p5, %p1533_p2  ;;  %p1540_p4 = por %p1539_p6, %p1538_p11 }
  0x6e   : > { %p1536_p9 = pneg %p1535_p7  ;;  %p1542_p3 = por %p1541_p8, %p1540_p4 }
  0x70   : > { %p1543_p1 = pnand %p1542_p3, %p1536_p9 }
  0x72   : > { %1546 = shalt.err (!%p1543_p1)
}
  0x73   : > { %s1547_s21 = scalar_lea.vmem %s2054_s24, 2048  ;;  %s1822_s5 = smov [#allocation6]  }
  0x74   : > { %p1548_p2 = scmp.ne.s32.totalorder %s2054_s24, %s1547_s21  ;;  %s1552_s19 = sshll.u32 %s1822_s5, 4  ;;  %s1553_s19 = int_to_ptr.vmem [resolvable:$false] %s1552_s19 }
  0x75   : > { %s1554_s26 = scalar_lea.vmem %s1553_s19, 4096  ;;  %p1555_p12 = scmp.lt.s32.totalorder %s2054_s24, %s1553_s19 }
  0x76   : > { %p1550_p7 = pnand %p1548_p2, %p2064_p5  ;;  %p1556_p0 = scmp.lt.s32.totalorder %s1554_s26, %s1547_s21 }
  0x78   : > { %p1551_p13 = pneg %p1550_p7  ;;  %p1557_p11 = por %p1556_p0, %p1555_p12 }
  0x7a   : > { %p1558_p6 = pnand %p1557_p11, %p1551_p13 }
  0x7c   : > { %1561 = shalt.err (!%p1558_p6)
}
  0x7d   : > { %s2421_s27 = smov 128   ;;  %s2424_s8 = smov 8  }
  0x7e   : > { %1338 = dma.hbm_to_vmem [thread:$0]  (!%p2050_p10), %s2046_s4, 2048, %s2054_s24, %s2058_s13, %s2421_s27, %s2421_s27, %s2424_s8  }
  0x7f   : > { %s1825_s16 = smov [#allocation14]   ;;  %s1562_s26 = scalar_lea.hbm %s2396_s6, 16 }
  0x80   : > { %s275_s5 = sshll.u32 %s1825_s16, 4  ;;  %p1563_p12 = scmp.ne.s32.totalorder %s2396_s6, %s1562_s26  ;;  %s276_s5 = int_to_ptr.vmem [resolvable:$true] %s275_s5 }
  0x81   : > { %p2451_p0 = scmp.ne.s32.totalorder %s2443_s18, 0  ;;  %p1569_p3 = scmp.lt.u32.totalorder %s1562_s26, %s2396_s6 }
  0x83   : > { %p1565_p1 = pnand %p1563_p12, %p2451_p0 }
  0x85   : > { %p1566_p13 = pneg %p1565_p1 }
  0x87   : > { %p1571_p9 = pnand %p1569_p3, %p1566_p13 }
  0x89   : > { %1574 = shalt.err (!%p1571_p9)
}
  0x8a   : > { %s1575_s4 = scalar_lea.vmem %s276_s5, 16  ;;  %s1582_s24 = scalar_lea.vmem %s276_s5, 32 }
  0x8b   : > { %p1576_p4 = scmp.ne.s32.totalorder %s276_s5, %s1575_s4  ;;  %p1583_p7 = scmp.lt.s32.totalorder %s276_s5, %s276_s5 }
  0x8c   : > { %p1584_p11 = scmp.lt.s32.totalorder %s1582_s24, %s1575_s4 }
  0x8d   : > { %p1578_p8 = pnand %p1576_p4, %p2451_p0 }
  0x8e   : > { %p1585_p6 = por %p1584_p11, %p1583_p7 }
  0x8f   : > { %p1579_p2 = pneg %p1578_p8 }
  0x91   : > { %p1586_p10 = pnand %p1585_p6, %p1579_p2 }
  0x93   : > { %1589 = shalt.err (!%p1586_p10)
}
  0x94   : > { %p2452_p12 = scmp.ne.s32.totalorder %s2441_s22, 0  ;;  %s42_s25 = sadd.s32 1, %s1814_s10 }
  0x95   : > { %s49_s14 = sadd.s32 1, %s1798_s29  ;;  %p2453_p10 = scmp.ne.s32.totalorder %s2445_s7, 0 }
  0x96   : > { %1331 = dma.hbm_to_vmem [thread:$0]  (!%p2452_p12), %s2396_s6, 16, %s276_s5, [#allocation13]  }
  0x97   : > { %s2497_s25 = smov (!%p2453_p10, %s42_s25), %s1814_s10  ;;  %p56_p0 = scmp.ne.s32.totalorder %s1798_s29, %s1794_s28 }
  0x98   : > { %s286_s22 = sand.u32 1, %s1798_s29   ;;  %p44_p1 = scmp.ge.s32.totalorder %s2497_s25, 2 }
  0x99   : > { %p2454_p13 = scmp.eq.s32.totalorder %s1818_s11, 0  ;;  %p2455_p9 = scmp.eq.s32.totalorder %s1928_s12, 7 }
  0x9a   : > { %s2499_s25 = smov (%p44_p1, %s2497_s25), 0  ;;  %s1117_s16 = sshll.u32 %s286_s22, 4 }
  0x9b   : > { %p58_p3 = por %p2454_p13, %p56_p0  ;;  %p2121_p4 = por %p2455_p9, %p56_p0 }
  0x9c   : > { %s1154_s5 = sshll.u32 %s1814_s10, 8  ;;  %s46_s19 = ssub.s32 %s1814_s10, %s2499_s25 }
  0x9d   : > { %s2456_s18 = scalar_select %p2121_p4, 1, 0 }
  0x9e   : > { %p47_p8 = scmp.eq.s32.totalorder %s46_s19, 0  ;;  %s2133_s26 = scalar_lea.hbm %s2390_s0, %s1154_s5 }
  0x9f   : > { %s290_s4 = scalar_lea.vmem [#allocation3], %s1117_s16  ;;  %p2457_p2 = scmp.lt.s32.totalorder %s1818_s11, 8 }
  0xa0   : > { %s297_s24 = sshll.u32 %s290_s4, 4  ;;  %s2146_s19 = scalar_lea.sflag [#allocation4], %s286_s22  ;;  %s2144_s24 = int_to_ptr.vmem [resolvable:$true] %s297_s24 }
  0xa1   : > { %p2137_p7 = pnand %p2457_p2, %p58_p3  ;;  %s1590_s5 = scalar_lea.hbm %s2133_s26, 256 }
  0xa2   : > { %s2142_s15 = scalar_select %p47_p8, %s1798_s29, %s49_s14  }
  0xa3   : > { %p1591_p11 = scmp.ne.s32.totalorder %s2133_s26, %s1590_s5  ;;  %p1592_p6 = pneg %p2137_p7 }
  0xa4   : > { %s1595_s21 = scalar_lea.hbm %s2390_s0, 512  ;;  %p1596_p0 = scmp.lt.u32.totalorder %s2133_s26, %s2390_s0 }
  0xa5   : > { %p1593_p12 = pnand %p1592_p6, %p1591_p11  ;;  %p1597_p1 = scmp.lt.u32.totalorder %s1595_s21, %s1590_s5 }
  0xa6   : > { %p1599_p3 = scmp.lt.u32.totalorder %s1590_s5, %s2133_s26 }
  0xa7   : > { %p1594_p10 = pneg %p1593_p12  ;;  %p1598_p13 = por %p1597_p1, %p1596_p0 }
  0xa9   : > { %p1600_p9 = por %p1599_p3, %p1598_p13 }
  0xab   : > { %p1601_p8 = pnand %p1600_p9, %p1594_p10 }
  0xad   : > { %1604 = shalt.err (!%p1601_p8)
}
  0xae   : > { %s1605_s14 = scalar_lea.vmem %s2144_s24, 256  ;;  %s1826_s22 = smov [#allocation3]  }
  0xaf   : > { %p1606_p2 = scmp.ne.s32.totalorder %s2144_s24, %s1605_s14  ;;  %s1610_s16 = sshll.u32 %s1826_s22, 4  ;;  %s1611_s16 = int_to_ptr.vmem [resolvable:$false] %s1610_s16 }
  0xb0   : > { %s1612_s27 = scalar_lea.vmem %s1611_s16, 512  ;;  %p1613_p4 = scmp.lt.s32.totalorder %s2144_s24, %s1611_s16 }
  0xb1   : > { %p1608_p11 = pnand %p1606_p2, %p1592_p6  ;;  %p1614_p0 = scmp.lt.s32.totalorder %s1612_s27, %s1605_s14 }
  0xb3   : > { %p1609_p12 = pneg %p1608_p11  ;;  %p1615_p1 = por %p1614_p0, %p1613_p4 }
  0xb5   : > { %p1616_p13 = pnand %p1615_p1, %p1609_p12 }
  0xb7   : > { %1619 = shalt.err (!%p1616_p13)
}
  0xb8   : > { %s2459_s5 = smov 128   ;;  %s1123_s7 = sshll.u32 %s1810_s9, 4 }
  0xb9   : > { %1335 = dma.hbm_to_vmem [thread:$0]  (!%p2137_p7), %s2133_s26, 256, %s2144_s24, %s2146_s19, %s2459_s5, %s2459_s5, %s2424_s8  }
  0xba   : > { %s2181_s14 = scalar_lea.hbm %s2392_s2, %s1123_s7  ;;  %s331_s1 = scalar_lea.vmem [#allocation8], %s2036_s23 }
  0xbb   : > { %s338_s22 = sshll.u32 %s331_s1, 4  ;;  %s1124_s16 = sshll.u32 %s2036_s23, 5  ;;  %s339_s22 = int_to_ptr.vmem [resolvable:$true] %s338_s22 }
  0xbc   : > { %s1620_s27 = scalar_lea.hbm %s2181_s14, 16  ;;  %s1625_s19 = scalar_lea.hbm %s2392_s2, 64 }
  0xbd   : > { %p1621_p4 = scmp.ne.s32.totalorder %s2181_s14, %s1620_s27  ;;  %p1626_p7 = scmp.lt.u32.totalorder %s2181_s14, %s2392_s2 }
  0xbe   : > { %p1627_p3 = scmp.lt.u32.totalorder %s1625_s19, %s1620_s27  ;;  %p1629_p8 = scmp.lt.u32.totalorder %s1620_s27, %s2181_s14 }
  0xbf   : > { %p1623_p6 = pnand %p1621_p4, %p2064_p5 }
  0xc0   : > { %p1628_p9 = por %p1627_p3, %p1626_p7 }
  0xc1   : > { %p1624_p10 = pneg %p1623_p6 }
  0xc2   : > { %p1630_p2 = por %p1629_p8, %p1628_p9 }
  0xc4   : > { %p1631_p11 = pnand %p1630_p2, %p1624_p10 }
  0xc6   : > { %1634 = shalt.err (!%p1631_p11)
}
  0xc7   : > { %s1635_s4 = scalar_lea.vmem %s339_s22, 16  ;;  %s1827_s1 = smov [#allocation8]  }
  0xc8   : > { %p1636_p12 = scmp.ne.s32.totalorder %s339_s22, %s1635_s4  ;;  %s1640_s8 = sshll.u32 %s1827_s1, 4  ;;  %s1641_s8 = int_to_ptr.vmem [resolvable:$false] %s1640_s8 }
  0xc9   : > { %s1642_s26 = scalar_lea.vmem %s1641_s8, 32  ;;  %p1643_p13 = scmp.lt.s32.totalorder %s339_s22, %s1641_s8 }
  0xca   : > { %p1638_p0 = pnand %p1636_p12, %p2064_p5  ;;  %p1644_p4 = scmp.lt.s32.totalorder %s1642_s26, %s1635_s4 }
  0xcc   : > { %p1639_p1 = pneg %p1638_p0  ;;  %p1645_p6 = por %p1644_p4, %p1643_p13 }
  0xce   : > { %p1646_p3 = pnand %p1645_p6, %p1639_p1 }
  0xd0   : > { %1649 = shalt.err (!%p1646_p3)
}
  0xd1   : > { %p2460_p7 = scmp.ne.s32.totalorder %s2449_s20, 0  ;;  %s1156_s27 = sshll.u32 %s1810_s9, 9 }
  0xd2   : > { %s2207_s21 = scalar_lea.hbm %s2393_s3, %s1156_s27  ;;  %s349_s8 = scalar_lea.vmem [#allocation9], %s1124_s16 }
  0xd3   : > { %1341 = dma.hbm_to_vmem [thread:$0]  (!%p2460_p7), %s2181_s14, 16, %s339_s22, %s2058_s13  }
  0xd4   : > { %s356_s7 = sshll.u32 %s349_s8, 4  ;;  %s2461_s4 = sand.u32 1, %s1818_s11   ;;  %s2211_s7 = int_to_ptr.vmem [resolvable:$true] %s356_s7 }
  0xd5   : > { %s2215_s1 = scalar_lea.sflag [#allocation10], %s2461_s4  ;;  %s1650_s26 = scalar_lea.hbm %s2207_s21, 512 }
  0xd6   : > { %p1651_p10 = scmp.ne.s32.totalorder %s2207_s21, %s1650_s26  ;;  %s1655_s23 = scalar_lea.hbm %s2393_s3, 2048 }
  0xd7   : > { %p1656_p2 = scmp.lt.u32.totalorder %s2207_s21, %s2393_s3  ;;  %p1657_p11 = scmp.lt.u32.totalorder %s1655_s23, %s1650_s26 }
  0xd8   : > { %p1653_p9 = pnand %p1651_p10, %p2064_p5  ;;  %p1659_p0 = scmp.lt.u32.totalorder %s1650_s26, %s2207_s21 }
  0xd9   : > { %p1658_p12 = por %p1657_p11, %p1656_p2 }
  0xda   : > { %p1654_p8 = pneg %p1653_p9 }
  0xdb   : > { %p1660_p1 = por %p1659_p0, %p1658_p12 }
  0xdd   : > { %p1661_p13 = pnand %p1660_p1, %p1654_p8 }
  0xdf   : > { %1664 = shalt.err (!%p1661_p13)
}
  0xe0   : > { %s1665_s16 = scalar_lea.vmem %s2211_s7, 512  ;;  %s1828_s24 = smov [#allocation9]  }
  0xe1   : > { %p1666_p4 = scmp.ne.s32.totalorder %s2211_s7, %s1665_s16  ;;  %s1670_s19 = sshll.u32 %s1828_s24, 4  ;;  %s1671_s19 = int_to_ptr.vmem [resolvable:$false] %s1670_s19 }
  0xe2   : > { %s1672_s8 = scalar_lea.vmem %s1671_s19, 1024  ;;  %p1673_p10 = scmp.lt.s32.totalorder %s2211_s7, %s1671_s19 }
  0xe3   : > { %p1668_p6 = pnand %p1666_p4, %p2064_p5  ;;  %p1674_p9 = scmp.lt.s32.totalorder %s1672_s8, %s1665_s16 }
  0xe5   : > { %p1669_p3 = pneg %p1668_p6  ;;  %p1675_p2 = por %p1674_p9, %p1673_p10 }
  0xe7   : > { %p1676_p11 = pnand %p1675_p2, %p1669_p3 }
  0xe9   : > { %1679 = shalt.err (!%p1676_p11)
}
  0xea   : > { %s2462_s4 = smov 8   ;;  %p2463_p5 = scmp.ne.s32.totalorder %s2440_s17, 0 }
  0xeb   : > { %1344 = dma.hbm_to_vmem [thread:$0]  (!%p2460_p7), %s2207_s21, 512, %s2211_s7, %s2215_s1, %s2459_s5, %s2459_s5, %s2462_s4  }
  0xec   : > { %368 = sbr.rel (%p2463_p5) target bundleno = 1972 (0x7b4), region = 48  ;;  %s2464_s30 = sld [smem:[#allocation27_spill]] (!%p2463_p5) }
  0xed   : > { %s2245_s26 = sand.u32 (!%p2463_p5), 1, %s1794_s28  }
  0xee   : > { %s1128_s13 = sshll.u32 (!%p2463_p5), %s2245_s26, 4  ;;  %s371_s14 = scalar_lea.sflag (!%p2463_p5), [#allocation4], %s2245_s26 }
  0xef   : > { %s374_s23 = scalar_lea.vmem (!%p2463_p5), [#allocation3], %s1128_s13 }
  0xf2   : > { %p2465_p8 = scmp.ne.s32.totalorder (!%p2463_p5), %s2464_s30, 0 }
  0xf4   : > { %1753 = dma.done.wait (%p2465_p8), %s371_s14, 256  }
  0xf5   : > { %1755 = vsyncadd (%p2465_p8), %s371_s14, 4294967040  ;;  %s2466_s20 = sld [smem:[#allocation22_spill]]  ;;  %s379_s21 = sand.u32 1, %s1928_s12  }
  0xf6   : > { %s2467_s5 = sld [smem:[#allocation28_spill]]  ;;  %s380_s1 = scalar_lea.sflag [#allocation7], %s379_s21 }
  0xfb   : > { %s2255_s17 = sand.u32 1, %s2466_s20  }
  0xfc   : > { %s1129_s7 = sshll.u32 %s2255_s17, 7  ;;  %p2468_p7 = scmp.ne.s32.totalorder %s2467_s5, 0 }
  0xfd   : > { %s2258_s22 = scalar_lea.vmem [#allocation6], %s1129_s7 }
  0xfe   : > { %1757 = dma.done.wait (%p2468_p7), %s380_s1, 2064  }
  0xff   : > { %1759 = vsyncadd (%p2468_p7), %s380_s1, 4294965232  ;;  %s1130_s27 = sshll.u32 %s2255_s17, 5  ;;  %s391_s16 = scalar_lea.vmem [#allocation8], %s2255_s17 }
 0x100   : > { %s397_s24 = scalar_lea.sflag [#allocation10], %s379_s21  ;;  %s2266_s19 = scalar_lea.vmem [#allocation9], %s1130_s27 }
 0x101   : > { %1761 = dma.done.wait (%p2468_p7), %s397_s24, 512  }
 0x102   : > { %1763 = vsyncadd (%p2468_p7), %s397_s24, 4294966784  ;;  %p2469_p12 = scmp.eq.s32.totalorder %s1928_s12, 0 }
 0x104   : > { %1765 = dma.done.wait (%p2469_p12), [#allocation10], 16   ;;  %p2470_p0 = pmov %p2469_p12 }
 0x106   : > { %1767 = vsyncadd (%p2470_p0), [#allocation10], 4294967280  ;;  %p2471_p1 = pmov %p2470_p0 }
 0x107   : > { %p2472_p13 = pmov %p2470_p0 }
 0x108   : > { %1769 = dma.done.wait (%p2471_p1), [#allocation13], 32  }
 0x109   : > { %1771 = vsyncadd (%p2472_p13), [#allocation13], 4294967264  ;;  %v457_v0 = vld [vmem:[%s374_s23] sm:$0xff]  ;;  %v458_v1 = vld [vmem:[%s374_s23 + $0x8] sm:$0xff]  ;;  %s2280_s8 = scalar_lea.vmem [#allocation15], %s1128_s13  ;;  %s2473_s4 = sld [smem:[#allocation25_spill]] }
 0x10f   : > { %p1135_p4 = scmp.ne.s32.totalorder %s2473_s4, 0 }
 0x110   : > { %v1136_v2 = vld [vmem:[#allocation11] ss:$0 sm:$0xff] (!%p1135_p4) }
 0x111   : > { %462 = sbr.rel (%p1135_p4) target bundleno = 280 (0x118), region = 80  ;;  %v470_v3 = vadd.f32 (!%p1135_p4), %v1136_v2, %v457_v0  ;;  %v471_v4 = vadd.f32 (!%p1135_p4), %v1136_v2, %v458_v1 }
 0x113   : > { %472 = vst [vmem:[#allocation2] sm:$0xff] (!%p1135_p4), %v470_v3  ;;  %473 = vst [vmem:[#allocation2 + $0x8] sm:$0xff] (!%p1135_p4), %v471_v4 }
 0x118 PF: > { %v474_v5 = vld [vmem:[%s2258_s22] sm:$0xff]  ;;  %v475_v6 = vld [vmem:[%s2258_s22 + $0x8] sm:$0xff]  ;;  %v476_v7 = vld [vmem:[%s2258_s22 + $0x10] sm:$0xff]  ;;  %1222 = vmatprep.mubr.f32.mxu0 %v457_v0  ;;  %vm578_vm0 = vcmask 261120   ;;  %s1829_s12 = smov 96   ;;  %v662_v39 = vlaneseq  ;;  %vm671_vm4 = vcmask 130048  }
 0x119   : > { %v1250_v8 = vpack.c.bf16 %v475_v6, %v474_v5  ;;  %v477_v9 = vld [vmem:[%s2258_s22 + $0x18] sm:$0xff]  ;;  %v478_v11 = vld [vmem:[%s2258_s22 + $0x20] sm:$0xff]  ;;  %v479_v12 = vld [vmem:[%s2258_s22 + $0x28] sm:$0xff]  ;;  %s1830_s30 = smov 64   ;;  %s2474_s13 = sld [smem:[#allocation25_spill]] }
 0x11a   : > { %v1254_v10 = vpack.c.bf16 %v477_v9, %v476_v7  ;;  %v1258_v13 = vpack.c.bf16 %v479_v12, %v478_v11  ;;  %v480_v14 = vld [vmem:[%s2258_s22 + $0x30] sm:$0xff]  ;;  %v481_v15 = vld [vmem:[%s2258_s22 + $0x38] sm:$0xff]  ;;  %v482_v17 = vld [vmem:[%s2258_s22 + $0x40] sm:$0xff]  ;;  %v663_v40 = vshrl.u32 %v662_v39, 7  ;;  %v666_v42 = vand.u32 127, %v662_v39 }
 0x11b   : > { %1251 = vmatprep.subr.bf16.mxu0 %v1250_v8  ;;  %v1262_v16 = vpack.c.bf16 %v481_v15, %v480_v14  ;;  %v483_v18 = vld [vmem:[%s2258_s22 + $0x48] sm:$0xff]  ;;  %v484_v20 = vld [vmem:[%s2258_s22 + $0x50] sm:$0xff]  ;;  %v485_v21 = vld [vmem:[%s2258_s22 + $0x58] sm:$0xff] }
 0x11c   : > { %1253 = vmatpush3.bf16.msra.mxu0 %v1250_v8  ;;  %v1266_v19 = vpack.c.bf16 %v483_v18, %v482_v17  ;;  %v1270_v22 = vpack.c.bf16 %v485_v21, %v484_v20  ;;  %v486_v23 = vld [vmem:[%s2258_s22 + $0x60] sm:$0xff]  ;;  %v487_v24 = vld [vmem:[%s2258_s22 + $0x68] sm:$0xff]  ;;  %v488_v26 = vld [vmem:[%s2258_s22 + $0x70] sm:$0xff]  ;;  %v664_v41 = vadd.s32 8, %v663_v40  ;;  %vm667_vm3 = vcmp.le.s32.totalorder %v666_v42, %v663_v40 }
 0x11d   : > { %1255 = vmatprep.subr.bf16.mxu0 %v1254_v10  ;;  %v1274_v25 = vpack.c.bf16 %v487_v24, %v486_v23  ;;  %v489_v27 = vld [vmem:[%s2258_s22 + $0x78] sm:$0xff]  ;;  %v1137_v29 = vld [vmem:[%s391_s16] ss:$0 sm:$0xff]  ;;  %vm1283_vm1 = vmpackc.low %vm578_vm0, %vm578_vm0 }
 0x11e   : > { %v1278_v28 = vpack.c.bf16 %v489_v27, %v488_v26  ;;  %vm668_vm2 = vcmp.le.s32.totalorder %v666_v42, %v664_v41  ;;  %v783_v62 = vld [vmem:[%s2266_s19] sm:$0xff]  ;;  %v784_v63 = vld [vmem:[%s2266_s19 + $0x8] sm:$0xff]  ;;  %v785_v5 = vld [vmem:[%s2266_s19 + $0x10] sm:$0xff] }
 0x11f   : > { %v1292_v3 = vpack.c.bf16 %v784_v63, %v783_v62  ;;  %v786_v6 = vld [vmem:[%s2266_s19 + $0x18] sm:$0xff]  ;;  %v781_v14 = vld [vmem:[#allocation2] sm:$0xff]  ;;  %p1146_p6 = scmp.ne.s32.totalorder %s2474_s13, 3 }
 0x120   : > { %1257 = vmatpush3.bf16.msra.mxu0 %v1254_v10  ;;  %v1296_v10 = vpack.c.bf16 %v786_v6, %v785_v5 }
 0x121   : > { %1259 = vmatprep.subr.bf16.mxu0 %v1258_v13 }
 0x124   : > { %1261 = vmatpush3.bf16.msra.mxu0 %v1258_v13  ;;  %v782_v13 = vld [vmem:[#allocation2 + $0x8] sm:$0xff] }
 0x125   : > { %1263 = vmatprep.subr.bf16.mxu0 %v1262_v16 }
 0x128   : > { %1265 = vmatpush3.bf16.msra.mxu0 %v1262_v16 }
 0x129   : > { %1267 = vmatprep.subr.bf16.mxu0 %v1266_v19 }
 0x12c   : > { %1269 = vmatpush3.bf16.msra.mxu0 %v1266_v19 }
 0x12d   : > { %1271 = vmatprep.subr.bf16.mxu0 %v1270_v22 }
 0x130   : > { %1273 = vmatpush3.bf16.msra.mxu0 %v1270_v22 }
 0x131   : > { %1275 = vmatprep.subr.bf16.mxu0 %v1274_v25 }
 0x134   : > { %1277 = vmatpush3.bf16.msra.mxu0 %v1274_v25 }
 0x135   : > { %1279 = vmatprep.subr.bf16.mxu0 %v1278_v28 }
 0x138   : > { %1281 = vmatpush3.bf16.msra.mxu0 %v1278_v28 }
 0x13b   : > { %1223 = vmatmul.mubr.f32.vlgmr.msra.gmra.mrb[0].mxu0 %v458_v1 }
 0x20e   : > { %v1224_v30 = vpop.f32.mrb[0].mxu0 }
 0x20f   : > { %v569_v31 = vadd.f32 %v1224_v30, %v1137_v29  ;;  %v563_v32 = vpop.f32.mrb[1].mxu0 }
 0x210   : > { %v564_v33 = vadd.f32 %v1137_v29, %v563_v32 }
 0x212   : > { %1229 = vmatprep.mubr.msk.f32.mxu1 %vm578_vm0, %v564_v33  ;;  %v1454_v34 = vpack.i.bf16 %v569_v31, %v564_v33 }
 0x214   : > { %1455 = vrot.lane.b32.xlu0 %v1454_v34, %s1829_s12 }
 0x286   : > { %v1456_v35 = vpop.permute.xlu0 %1455 }
 0x287   : > { %v1458_v36 = vunpack.i.h.bf16 %v1456_v35  ;;  %v1457_v37 = vunpack.i.l.bf16 %v1456_v35 }
 0x289   : > { %v1282_v38 = vpack.c.bf16 %v1458_v36, %v1457_v37  ;;  %v1147_v36 = vld [vmem:[#allocation12] ss:$0 sm:$0xff] (!%p1146_p6) }
 0x28b   : > { %1284 = vmatprep.subr.msk.bf16.mxu1 %vm1283_vm1, %v1282_v38 }
 0x28c   : > { %1287 = vmatpush3.bf16.xpose.msk.msra.mxu1 %vm1283_vm1, %v1282_v38  ;;  %v1148_v38 = vld [vmem:[#allocation14] ss:$0 sm:$0xff] (!%p1146_p6) }
 0x293   : > { %1230 = vmatmul.mubr.msk.f32.vlgmr.msra.gmra.mrb[0].mxu1 %vm578_vm0, %v569_v31 }
 0x366   : > { %v1231_v43 = vpop.f32.mrb[0].mxu1 }
 0x367   : > { %v670_v44 = vsel %vm668_vm2, %v1231_v43, -1e+30  ;;  %v653_v45 = vpop.f32.mrb[1].mxu1 }
 0x368   : > { %v669_v46 = vsel %vm667_vm3, %v653_v45, -1e+30  ;;  %v675_v47 = vsel %vm671_vm4, %v670_v44, -inf }
 0x369   : > { %676 = vmax.xlane.f32.xlu1 %v675_v47  ;;  %v672_v48 = vsel %vm671_vm4, %v669_v46, -inf }
 0x36a   : > { %673 = vmax.xlane.f32.xlu0 %v672_v48 }
 0x3f6   : > { %v677_v49 = vpop.xlane.xlu1 %676 }
 0x3f7   : > { %v679_v50 = vsub.f32 %v670_v44, %v677_v49  ;;  %v674_v51 = vpop.xlane.xlu0 %673 }
 0x3f8   : > { %v678_v52 = vsub.f32 %v669_v46, %v674_v51 }
 0x3f9   : > { %v682_v53 = vmul.f32 1.442695, %v679_v50 }
 0x3fa   : > { %v680_v54 = vmul.f32 1.442695, %v678_v52 }
 0x3fb   : > { %1464 = vpow2.f32 %v682_v53 }
 0x3fc   : > { %1466 = vpow2.f32 %v680_v54 }
 0x405   : > { %v1465_v55 = vpop.eup %1464 }
 0x406   : > { %v687_v56 = vsel %vm671_vm4, %v1465_v55, 0.0  ;;  %v1467_v57 = vpop.eup %1466 }
 0x407   : > { %688 = vadd.xlane.f32.xlu1 %v687_v56  ;;  %v684_v58 = vsel %vm671_vm4, %v1467_v57, 0.0 }
 0x40b   : > { %685 = vadd.xlane.f32.xlu1 %v684_v58 }
 0x41c   : > { %1460 = vrot.lane.b32.xlu1 %v1454_v34, %s1830_s30 }
 0x494   : > { %v689_v59 = vpop.xlane.xlu1 %688 }
 0x495   : > { %1468 = vrcp.f32 %v689_v59 }
 0x498   : > { %v686_v60 = vpop.xlane.xlu1 %685 }
 0x499   : > { %1470 = vrcp.f32 %v686_v60 }
 0x49c   : > { %v1461_v61 = vpop.permute.xlu1 %1460 }
 0x49d   : > { %v1463_v0 = vunpack.i.h.bf16 %v1461_v61  ;;  %v1462_v1 = vunpack.i.l.bf16 %v1461_v61 }
 0x49f   : > { %v1288_v2 = vpack.c.bf16 %v1463_v0, %v1462_v1  ;;  %v1469_v4 = vpop.eup %1468 }
 0x4a0   : > { %v693_v9 = vmul.f32 %v1469_v4, %v1465_v55 }
 0x4a1   : > { %1289 = vmatprep.subr.bf16.mxu1 %v1288_v2 }
 0x4a2   : > { %1291 = vmatpush3.bf16.msra.mxu1 %v1288_v2 }
 0x4a3   : > { %v1471_v7 = vpop.eup %1470  ;;  %1293 = vmatprep.subr.bf16.mxu1 %v1292_v3 }
 0x4a4   : > { %v692_v8 = vmul.f32 %v1471_v7, %v1467_v57 }
 0x4a6   : > { %1236 = vmatprep.mubr.msk.f32.mxu1 %vm671_vm4, %v692_v8 }
 0x4a7   : > { %1237 = vmatmul.mubr.msk.f32.vlgmr.msra.gmra.mrb[2].mxu1 %vm671_vm4, %v693_v9 }
 0x4a8   : > { %1295 = vmatpush3.bf16.msra.mxu1 %v1292_v3 }
 0x4a9   : > { %1297 = vmatprep.subr.bf16.mxu1 %v1296_v10 }
 0x4ac   : > { %1299 = vmatpush3.bf16.msra.mxu1 %v1296_v10 }
 0x57a   : > { %v1238_v11 = vpop.f32.mrb[2].mxu1 }
 0x57b   : > { %v772_v12 = vpop.f32.mrb[3].mxu1 }
 0x57c   : > { %1247 = vmatprep.mubr.msk.f32.mxu1 %vm578_vm0, %v772_v12 }
 0x57d   : > { %1248 = vmatmul.mubr.msk.f32.vlgmr.msra.gmra.mrb[4].mxu1 %vm578_vm0, %v1238_v11 }
 0x64e   : > { %875 = sbr.rel (%p1146_p6) target bundleno = 1944 (0x798), region = 84 }
 0x650   : > { %v1249_v15 = vpop.f32.mrb[4].mxu1 }
 0x651   : > { %v869_v16 = vadd.f32 %v1249_v15, %v782_v13  ;;  %v859_v17 = vpop.f32.mrb[5].mxu1 }
 0x652   : > { %v868_v18 = vadd.f32 %v859_v17, %v781_v14 }
 0x653   : > { %871 = vst [vmem:[#allocation2 + $0x8] sm:$0xff] %v869_v16 }
 0x654   : > { %870 = vst [vmem:[#allocation2] sm:$0xff] %v868_v18 }
 0x65a   : > { %v877_v20 = vld [vmem:[#allocation2 + $0x8] sm:$0xff] }
 0x65b   : > { %v876_v19 = vld [vmem:[#allocation2] sm:$0xff] }
 0x65c   : > { %880 = vadd.xlane.f32.xlu0 %v876_v19 }
 0x660   : > { %882 = vadd.xlane.f32.xlu0 %v877_v20 }
 0x6e9   : > { %v881_v21 = vpop.xlane.xlu0 %880 }
 0x6ea   : > { %v885_v22 = vmul.f32 0.0078125, %v881_v21 }
 0x6ec   : > { %v887_v23 = vsub.f32 %v876_v19, %v885_v22 }
 0x6ed   : > { %v883_v24 = vpop.xlane.xlu0 %882 }
 0x6ee   : > { %v886_v25 = vmul.f32 0.0078125, %v883_v24  ;;  %v889_v26 = vmul.f32 %v887_v23, %v887_v23 }
 0x6f0   : > { %v888_v27 = vsub.f32 %v877_v20, %v886_v25  ;;  %891 = vadd.xlane.f32.xlu1 %v889_v26 }
 0x6f2   : > { %v890_v28 = vmul.f32 %v888_v27, %v888_v27 }
 0x6f4   : > { %893 = vadd.xlane.f32.xlu1 %v890_v28 }
 0x77d   : > { %v892_v29 = vpop.xlane.xlu1 %891 }
 0x77e   : > { %v895_v30 = vmul.f32 0.0078125, %v892_v29 }
 0x780   : > { %v897_v31 = vadd.f32 1e-05, %v895_v30 }
 0x781   : > { %v894_v32 = vpop.xlane.xlu1 %893 }
 0x782   : > { %1472 = vrsqrt.f32 %v897_v31  ;;  %v896_v33 = vmul.f32 0.0078125, %v894_v32 }
 0x784   : > { %v898_v34 = vadd.f32 1e-05, %v896_v33 }
 0x786   : > { %1474 = vrsqrt.f32 %v898_v34 }
 0x78c   : > { %v1473_v35 = vpop.eup %1472 }
 0x78d   : > { %v901_v37 = vmul.f32 %v1473_v35, %v887_v23 }
 0x78f   : > { %v909_v39 = vmul.f32 %v1147_v36, %v901_v37 }
 0x790   : > { %v1475_v40 = vpop.eup %1474 }
 0x791   : > { %v917_v41 = vadd.f32 %v1148_v38, %v909_v39  ;;  %v902_v42 = vmul.f32 %v1475_v40, %v888_v27 }
 0x793   : > { %919 = vst [vmem:[%s2280_s8] sm:$0xff] %v917_v41  ;;  %v910_v43 = vmul.f32 %v1147_v36, %v902_v42 }
 0x795   : > { %v918_v44 = vadd.f32 %v1148_v38, %v910_v43 }
 0x797   : > { %920 = vst [vmem:[%s2280_s8 + $0x8] sm:$0xff] %v918_v44 }
 0x798 PF: > { %s2475_s14 = sld [smem:[#allocation26_spill]]  ;;  %s2476_s21 = sld [smem:[#allocation35_spill]] }
 0x799   : > { %s935_s7 = sshll.u32 %s2280_s8, 4  ;;  %s922_s1 = scalar_lea.sflag [#allocation5], %s2245_s26  ;;  %s2327_s7 = int_to_ptr.vmem [resolvable:$true] %s935_s7 }
 0x79a   : > { %s1680_s22 = scalar_lea.vmem %s2327_s7, 256  ;;  %p2477_p10 = scmp.ne.s32.totalorder %s2456_s18, 0 }
 0x79b   : > { %p1681_p3 = scmp.ne.s32.totalorder %s2327_s7, %s1680_s22  ;;  %s1831_s27 = smov [#allocation15]  }
 0x79c   : > { %s1684_s16 = sshll.u32 %s1831_s27, 4  ;;  %s1685_s16 = int_to_ptr.vmem [resolvable:$false] %s1684_s16 }
 0x79d   : > { %p1682_p9 = pnand %p1681_p3, %p2477_p10  ;;  %s1686_s24 = scalar_lea.vmem %s1685_s16, 512 }
 0x79e   : > { %s1157_s23 = sshll.u32 %s2475_s14, 8  ;;  %p1687_p11 = scmp.lt.s32.totalorder %s2327_s7, %s1685_s16 }
 0x79f   : > { %s2324_s17 = scalar_lea.hbm %s2476_s21, %s1157_s23  ;;  %p1683_p2 = pneg %p1682_p9 }
 0x7a0   : > { %p1688_p5 = scmp.lt.s32.totalorder %s1686_s24, %s1680_s22 }
 0x7a2   : > { %p1689_p8 = por %p1688_p5, %p1687_p11 }
 0x7a4   : > { %p1690_p7 = pnand %p1689_p8, %p1683_p2 }
 0x7a6   : > { %1693 = shalt.err (!%p1690_p7)
}
 0x7a7   : > { %s1694_s19 = scalar_lea.hbm %s2324_s17, 256  ;;  %s1698_s12 = scalar_lea.hbm %s2476_s21, 512 }
 0x7a8   : > { %p1695_p12 = scmp.ne.s32.totalorder %s2324_s17, %s1694_s19  ;;  %p1699_p13 = scmp.lt.u32.totalorder %s2324_s17, %s2476_s21 }
 0x7a9   : > { %p1700_p4 = scmp.lt.u32.totalorder %s1698_s12, %s1694_s19  ;;  %p1702_p3 = scmp.lt.u32.totalorder %s1694_s19, %s2324_s17 }
 0x7aa   : > { %p1696_p0 = pnand %p1695_p12, %p2477_p10 }
 0x7ab   : > { %p1701_p6 = por %p1700_p4, %p1699_p13 }
 0x7ac   : > { %p1697_p1 = pneg %p1696_p0 }
 0x7ad   : > { %p1703_p9 = por %p1702_p3, %p1701_p6 }
 0x7af   : > { %p1704_p2 = pnand %p1703_p9, %p1697_p1 }
 0x7b1   : > { %1707 = shalt.err (!%p1704_p2)
}
 0x7b2   : > { %s1832_s14 = smov 128   ;;  %s1833_s23 = smov 8  }
 0x7b3   : > { %1320 = dma.vmem_to_hbm [thread:$0]  (%p2477_p10), %s2327_s7, 256, %s2324_s17, %s922_s1, %s1832_s14, %s1832_s14, %s1833_s23  }
 0x7b4 PF: > { %s2478_s20 = sld [smem:[#allocation24_spill]]  ;;  %s2479_s5 = sld [smem:[#allocation29_spill]] }
 0x7b5   : > { %p1356_p11 = scmp.ge.s32.totalorder %s1818_s11, 2 }
 0x7ba   : > { %s950_s22 = sand.u32 1, %s2478_s20   ;;  %p2480_p5 = scmp.ne.s32.totalorder %s2479_s5, 0 }
 0x7bb   : > { %s951_s27 = scalar_lea.sflag [#allocation5], %s950_s22 }
 0x7bc   : > { %p1346_p8 = pnand %p1356_p11, %p2480_p5 }
 0x7be   : > { %1773 = dma.done.wait (!%p1346_p8), %s951_s27, 256  }
 0x7bf   : > { %1775 = vsyncadd (!%p1346_p8), %s951_s27, 4294967040  ;;  %s30_s11 = sadd.s32 1, %s1818_s11   ;;  %s2481_s24 = sld [smem:[#allocation22_spill]] }
 0x7c0   : > { %p27_p7 = scmp.ge.s32.totalorder %s30_s11, 10   ;;  %s2482_s16 = sld [smem:[#allocation23_spill]] }
 0x7c1   : > { %s2483_s26 = sld [smem:[#allocation31_spill]]  ;;  %s2484_s18 = sld [smem:[#allocation30_spill]] }
 0x7c2   : > { %s2485_s17 = smov %s2499_s25  ;;  %s2487_s27 = smov %s1794_s28 }
 0x7c3   : > { %s2488_s28 = smov %s1798_s29  ;;  %s2489_s29 = smov %s2142_s15 }
 0x7c4   : > { %s2490_s30 = smov %s1810_s9  ;;  %s2491_s8 = smov %s1814_s10 }
 0x7c5   : > { %s2493_s10 = smov %s2485_s17  ;;  %29 = sbr.rel (!%p27_p7) target bundleno = 19 (0x13), region = 150 }
 0x7c6   : > { %s2486_s25 = smov %s2482_s16 }
 0x7c7   : > { %s2492_s9 = smov %s2484_s18 }
 0x7cc   :  { %956 = vsyncpa [#allocation4], 1 }
 0x7cd   :  { %958 = vsyncpa [#allocation4 + $0x1], 1 }
 0x7ce   :  { %959 = vsyncpa [#allocation7], 1 }
 0x7cf   :  { %961 = vsyncpa [#allocation7 + $0x1], 1 }
 0x7d0   :  { %962 = vsyncpa [#allocation10], 1 }
 0x7d1   :  { %964 = vsyncpa [#allocation10 + $0x1], 1 }
 0x7d2   :  { %965 = vsyncpa [#allocation13], 1 }
 0x7d3   :  { %966 = vsyncpa [#allocation5], 1 }
 0x7d4   :  { %968 = vsyncpa [#allocation5 + $0x1], 1 }

</bundles_post_ra>
